<compile_context>
chip_gen: v7x
topology: tpu7x:2x2x1
jax: 0.10.0
libtpu: 0.0.40
codegen_flags: <defaults>
</compile_context>

<pallas_src>
import functools

import jax
import jax.numpy as jnp
from jax.experimental import pallas as pl
from jax.experimental.pallas import tpu as pltpu

OUT_LANES = 128  # lane width of the per-grid-step result row (unmasked, lane-dense vst)


# --------------------------------------------------------------------------------------
# VMEM budgeting helpers
# --------------------------------------------------------------------------------------

def _physical_vmem_bytes():
    """Physical VMEM per TensorCore, with a conservative fallback (v7x = 64 MiB)."""
    try:
        return int(pltpu.get_tpu_info().vmem_capacity_bytes)
    except Exception:
        return 64 * (1 << 20)


def _vmem_limit_or_none(live_bytes):
    # Default scoped VMEM: 16 MiB on v5e, 32 MiB on v6e/v7x.  Raise it whenever our
    # estimate exceeds ~14 MiB, but never request more than physical minus headroom.
    if live_bytes <= 14 * (1 << 20):
        return None
    return min(int(1.25 * live_bytes), _physical_vmem_bytes() - (4 << 20))


def _diag_mosaic_params(bt, N, F1, F2):
    # Per grid step (f32): per-pair temps (~3 NxN: gram, pdist, K, plus small vectors),
    # double-buffered x/y input blocks, the shared d column and the output row.
    per_pair = 4 * (3 * N * N + 3 * N * (F1 + F2) + 16 * N)
    total = (bt * per_pair                      # unrolled per-pair temps (upper bound)
             + 2 * 4 * bt * N * (F1 + F2)       # double-buffered x/y blocks
             + 2 * 4 * N                        # d column (double-buffered)
             + 2 * 4 * OUT_LANES)               # output row
    return pltpu.CompilerParams(
        dimension_semantics=("parallel",),      # batch groups are independent (v7x 2 TCs)
        vmem_limit_bytes=_vmem_limit_or_none(total),
    )


def _dense_mosaic_params(N, F1, F2):
    # Dense fallback: ~7 NxN intermediates + double-buffered D + double-buffered x/y.
    total = 4 * (9 * N * N + 4 * N * (F1 + F2) + 8 * N)
    return pltpu.CompilerParams(
        dimension_semantics=("arbitrary",),     # unblocked SMEM output shared across steps
        vmem_limit_bytes=_vmem_limit_or_none(total),
    )


# --------------------------------------------------------------------------------------
# Diagonal-D fast path (covers the post-update_D case): no O(N^3) work, no L / Lc / Kd
# --------------------------------------------------------------------------------------

def _hsic_diag_pair(x, y, dcol, inv_scale):
    """HSIC for one (x, y) pair with diagonal D (dcol: (N,1)).  Returns a (1,1) result."""
    # Gaussian kernel K(x) = exp(-pairwise_sq_dists(x)); Gram via dot_general (no x.T copy)
    sq = jnp.sum(x * x, axis=-1, keepdims=True)                               # (N,1)  VPU
    gram = jax.lax.dot_general(x, x, (((1,), (1,)), ((), ())),
                               preferred_element_type=jnp.float32)            # (N,N)  MXU
    pdist = jnp.maximum(sq + sq.T - 2.0 * gram, 0.0)   # clamp f32 cancellation noise
    K = jnp.exp(-pdist)                                                       # EUP

    # Kd = diag(d) K diag(d) is never materialized; fold d into y instead.
    yd = dcol * y                                                             # (N,F2)
    Z = jnp.dot(K, yd, preferred_element_type=jnp.float32)                    # (N,F2) MXU
    term1 = jnp.sum(Z * yd, keepdims=True)            # sum(Kd .* L)          # (1,1)

    # Row sums of Kd (Kd symmetric => row sums == col sums).
    w = dcol * jnp.dot(K, dcol, preferred_element_type=jnp.float32)           # (N,1)
    sum_kd = jnp.sum(w, keepdims=True)                                        # (1,1)

    # Row/col means of L = y y^T computed exactly from y: rm_i = y_i . ybar, tm = |ybar|^2.
    ybar = jnp.mean(y, axis=0, keepdims=True)                                 # (1,F2)
    tm = jnp.sum(ybar * ybar, keepdims=True)                                  # (1,1)
    rm = jax.lax.dot_general(y, ybar, (((1,), (1,)), ((), ())),
                             preferred_element_type=jnp.float32)              # (N,1)
    cross = jnp.sum(w * rm, keepdims=True)                                    # (1,1)

    # trace(Kd H L H) / (N-1)^2
    return (term1 - 2.0 * cross + tm * sum_kd) * inv_scale                    # (1,1)


def hsic_diag_kernel(x_ref, y_ref, d_ref, out_ref, *, bt, inv_scale):
    """x_ref: (bt,N,F1), y_ref: (bt,N,F2), d_ref: (N,1), out_ref: (1, OUT_LANES)."""
    lane = jax.lax.broadcasted_iota(jnp.int32, (1, OUT_LANES), 1)
    dcol = d_ref[...]
    acc = jnp.zeros((1, OUT_LANES), jnp.float32)
    for i in range(bt):                       # small, statically unrolled pack of pairs
        r = _hsic_diag_pair(x_ref[i], y_ref[i], dcol, inv_scale)
        acc = jnp.where(lane == i, r, acc)    # VPU select-insert (no scalar VMEM store)
    out_ref[...] = acc


def _pick_bt(B, N, F1, F2, max_bt=32):
    per_pair = 4 * (3 * N * N + 3 * N * (F1 + F2) + 16 * N)
    budget = 8 * (1 << 20)
    return int(max(1, min(B, max_bt, OUT_LANES, budget // max(per_pair, 1))))


def hsic_forward_batched(x, y, d, bt=None):
    """Diagonal-D fast path.  x: (B,N,F1), y: (B,N,F2), d: (N,) -> (B,) f32 HSIC values."""
    x = jnp.asarray(x, jnp.float32)
    y = jnp.asarray(y, jnp.float32)
    d = jnp.asarray(d, jnp.float32)
    B, N, F1 = x.shape
    F2 = y.shape[-1]

    if bt is None:
        bt = _pick_bt(B, N, F1, F2)
    bt = int(max(1, min(bt, B, OUT_LANES)))
    G = pl.cdiv(B, bt)
    b_pad = G * bt
    if b_pad != B:
        x = jnp.concatenate([x, jnp.zeros((b_pad - B, N, F1), jnp.float32)], axis=0)
        y = jnp.concatenate([y, jnp.zeros((b_pad - B, N, F2), jnp.float32)], axis=0)

    dcol = d.reshape(N, 1)
    inv_scale = 1.0 / float((N - 1) ** 2)
    kernel = functools.partial(hsic_diag_kernel, bt=bt, inv_scale=inv_scale)

    out = pl.pallas_call(
        kernel,
        out_shape=jax.ShapeDtypeStruct((G, 1, OUT_LANES), jnp.float32),
        grid=(G,),
        in_specs=[
            pl.BlockSpec((bt, N, F1), lambda g: (g, 0, 0)),   # bt pairs per grid step
            pl.BlockSpec((bt, N, F2), lambda g: (g, 0, 0)),
            pl.BlockSpec((N, 1), lambda g: (0, 0)),           # shared d column
        ],
        out_specs=pl.BlockSpec((None, 1, OUT_LANES), lambda g: (g, 0, 0)),
        compiler_params=_diag_mosaic_params(bt, N, F1, F2),
    )(x, y, dcol)

    return out[:, 0, :bt].reshape(-1)[:B]


# --------------------------------------------------------------------------------------
# Dense-D fallback (module default D = ones(N,N), or any externally supplied dense D)
# --------------------------------------------------------------------------------------

def _hsic_dense_single(x, y, D, n):
    sq = jnp.sum(x * x, axis=-1, keepdims=True)
    gram_x = jnp.dot(x, x.T, preferred_element_type=jnp.float32)
    pdist = jnp.maximum(-2.0 * gram_x + sq + sq.T, 0.0)
    K = jnp.exp(-pdist)
    Kd = jnp.dot(jnp.dot(D, K, preferred_element_type=jnp.float32), D,
                 preferred_element_type=jnp.float32)
    L = jnp.dot(y, y.T, preferred_element_type=jnp.float32)
    row_mean = jnp.mean(L, axis=1, keepdims=True)
    col_mean = jnp.mean(L, axis=0, keepdims=True)
    tot_mean = jnp.mean(L)
    Lc = L - row_mean - col_mean + tot_mean                    # = H L H
    return jnp.sum(Kd * Lc) * (1.0 / float((n - 1) ** 2))


def hsic_dense_kernel(x_ref, y_ref, d_ref, out_ref):
    b = pl.program_id(0)
    n = x_ref.shape[0]
    out_ref[b] = _hsic_dense_single(x_ref[...], y_ref[...], d_ref[...], n)


def hsic_forward_dense_batched(x, y, D):
    """Dense-D fallback.  x: (B,N,F1), y: (B,N,F2), D: (N,N) -> (B,) f32."""
    x = jnp.asarray(x, jnp.float32)
    y = jnp.asarray(y, jnp.float32)
    D = jnp.asarray(D, jnp.float32)
    B, N, F1 = x.shape
    F2 = y.shape[-1]
    return pl.pallas_call(
        hsic_dense_kernel,
        out_shape=jax.ShapeDtypeStruct((B,), jnp.float32),
        grid=(B,),
        in_specs=[
            pl.BlockSpec((None, N, F1), lambda b: (b, 0, 0)),
            pl.BlockSpec((None, N, F2), lambda b: (b, 0, 0)),
            pl.BlockSpec((N, N), lambda b: (0, 0)),
        ],
        out_specs=pl.BlockSpec(memory_space=pltpu.MemorySpace.SMEM),
        compiler_params=_dense_mosaic_params(N, F1, F2),
    )(x, y, D)


# --------------------------------------------------------------------------------------
# Module-level forward (dispatch)
# --------------------------------------------------------------------------------------

def hsic_forward(x, y, D=None):
    """HSIC.forward(input1, input2) semantics.

    D=None  -> module default stored D = ones(N,N) (fix_D=True path; mathematically 0).
    D 1-D   -> diagonal D given as a vector (post-update_D): fast path, no O(N^3) work.
    D 2-D   -> arbitrary dense D: fallback kernel with the explicit D @ K @ D matmuls.
    """
    x = jnp.asarray(x, jnp.float32)
    y = jnp.asarray(y, jnp.float32)
    N = x.shape[0]
    if D is None:
        D = jnp.ones((N, N), jnp.float32)
    D = jnp.asarray(D, jnp.float32)
    if D.ndim == 1:
        return hsic_forward_batched(x[None], y[None], D)[0]
    return hsic_forward_dense_batched(x[None], y[None], D)[0]


# ------------------------- plain-JAX reference (for checking) -------------------------

def _mm(a, b):
    return jnp.dot(a, b, precision=jax.lax.Precision.HIGHEST)


def hsic_reference(x, y, D, N):
    """Direct transcription of the PyTorch biased_estimator (f32, explicit H matmuls)."""
    H = jnp.eye(N, dtype=jnp.float32) - jnp.ones((N, N), jnp.float32) / N
    sq = jnp.sum(x * x, axis=-1, keepdims=True)
    K = jnp.exp(-(-2.0 * _mm(x, x.T) + sq + sq.T))
    K = _mm(_mm(D, K), D)
    L = _mm(y, y.T)
    KH = _mm(K, H)
    LH = _mm(L, H)
    return jnp.trace(_mm(KH, LH / float((N - 1) ** 2)))


if __name__ == "__main__":
    N, F1, F2 = 8, 4, 4
    key = jax.random.PRNGKey(0)
    k1, k2, k3, k4, k5 = jax.random.split(key, 5)
    x = jax.random.uniform(k1, (N, F1), dtype=jnp.float32)
    y = jax.random.uniform(k2, (N, F2), dtype=jnp.float32)

    # 1) Module default: fix_D=True, stored D = ones(N,N) -> dense fallback path.
    #    Mathematically the estimator is 0 here; both sides are float noise.
    out_ones = jax.block_until_ready(hsic_forward(x, y))
    ref_ones = hsic_reference(x, y, jnp.ones((N, N), jnp.float32), N)
    assert jnp.abs(out_ones - ref_ones) < 5e-4, (out_ones, ref_ones)

    # 2) Diagonal D (shape produced by update_D), supplied as a vector -> fast path.
    d_vec = 0.5 + jax.random.uniform(k3, (N,), dtype=jnp.float32)
    out_diag = jax.block_until_ready(hsic_forward(x, y, d_vec))
    ref_diag = hsic_reference(x, y, jnp.diag(d_vec), N)
    assert jnp.allclose(out_diag, ref_diag, rtol=2e-3, atol=5e-4), (out_diag, ref_diag)

    # 3) Same diagonal D supplied as a dense matrix -> exercises the dense fallback math.
    out_dense = jax.block_until_ready(hsic_forward(x, y, jnp.diag(d_vec)))
    assert jnp.allclose(out_dense, ref_diag, rtol=2e-3, atol=5e-4), (out_dense, ref_diag)

    # 4) Batched diag fast path with batch packing + padding: B=5, bt=2 -> grid of 3.
    B = 5
    xb = jax.random.uniform(k4, (B, N, F1), dtype=jnp.float32)
    yb = jax.random.uniform(k5, (B, N, F2), dtype=jnp.float32)
    outb = jax.block_until_ready(hsic_forward_batched(xb, yb, d_vec, bt=2))
    refb = jnp.stack([hsic_reference(xb[i], yb[i], jnp.diag(d_vec), N) for i in range(B)])
    assert jnp.allclose(outb, refb, rtol=2e-3, atol=5e-4), (outb, refb)

    print("KERNEL_OK")
</pallas_src>

<mosaic_0001>
module attributes {stable_mosaic.version = 11 : i64} {
  func.func @hsic_dense_kernel(%arg0: i32, %arg1: memref<1x8x4xf32, #tpu.memory_space<vmem>>, %arg2: memref<1x8x4xf32, #tpu.memory_space<vmem>>, %arg3: memref<8x8xf32, #tpu.memory_space<vmem>>, %arg4: memref<1xf32, #tpu.memory_space<smem>>) attributes {dimension_semantics = [#tpu.dimension_semantics<arbitrary>], iteration_bounds = array<i64: 1>, scalar_prefetch = 0 : i64, scratch_operands = 0 : i64, tpu.core_type = #tpu.core_type<tc>, window_params = [{transform_indices = @transform_0, window_bounds = array<i64: 1, 8, 4>}, {transform_indices = @transform_1, window_bounds = array<i64: 1, 8, 4>}, {pipeline_mode = #tpu.pipeline_mode<synchronous>, transform_indices = @transform_2, window_bounds = array<i64: 8, 8>}, {transform_indices = @transform_3, window_bounds = array<i64: 1>}]} {
    %c0 = arith.constant 0 : index
    %c0_0 = arith.constant 0 : index
    %c0_1 = arith.constant 0 : index
    %0 = vector.load %arg1[%c0, %c0_0, %c0_1] : memref<1x8x4xf32, #tpu.memory_space<vmem>>, vector<1x8x4xf32>
    %1 = vector.shape_cast %0 : vector<1x8x4xf32> to vector<8x4xf32>
    %c0_2 = arith.constant 0 : index
    %c0_3 = arith.constant 0 : index
    %c0_4 = arith.constant 0 : index
    %2 = vector.load %arg2[%c0_2, %c0_3, %c0_4] : memref<1x8x4xf32, #tpu.memory_space<vmem>>, vector<1x8x4xf32>
    %3 = vector.shape_cast %2 : vector<1x8x4xf32> to vector<8x4xf32>
    %c0_5 = arith.constant 0 : index
    %c0_6 = arith.constant 0 : index
    %4 = vector.load %arg3[%c0_5, %c0_6] : memref<8x8xf32, #tpu.memory_space<vmem>>, vector<8x8xf32>
    %5 = arith.mulf %1, %1 : vector<8x4xf32>
    %cst = arith.constant dense<0.000000e+00> : vector<8xf32>
    %6 = vector.multi_reduction <add>, %5, %cst [1] : vector<8x4xf32> to vector<8xf32>
    %7 = vector.shape_cast %6 : vector<8xf32> to vector<8x1xf32>
    %8 = tpu.transpose %1, [1, 0] : vector<8x4xf32> -> vector<4x8xf32>
    %cst_7 = arith.constant dense<0.000000e+00> : vector<8x8xf32>
    %9 = tpu.matmul %1, %8, %cst_7 {dimension_numbers = #tpu.dot_dimension_numbers<[1], [0], [0], [1], [0, 0, 1, 1], [], []>} : vector<8x4xf32>, vector<4x8xf32>, vector<8x8xf32> -> vector<8x8xf32>
    %cst_8 = arith.constant -2.000000e+00 : f32
    %10 = vector.broadcast %cst_8 : f32 to vector<8x8xf32>
    %11 = arith.mulf %10, %9 : vector<8x8xf32>
    %12 = vector.broadcast %7 : vector<8x1xf32> to vector<8x8xf32>
    %13 = arith.addf %11, %12 : vector<8x8xf32>
    %14 = tpu.transpose %7, [1, 0] : vector<8x1xf32> -> vector<1x8xf32>
    %15 = vector.broadcast %14 : vector<1x8xf32> to vector<8x8xf32>
    %16 = arith.addf %13, %15 : vector<8x8xf32>
    %cst_9 = arith.constant 0.000000e+00 : f32
    %17 = vector.broadcast %cst_9 : f32 to vector<8x8xf32>
    %18 = arith.maximumf %16, %17 : vector<8x8xf32>
    %cst_10 = arith.constant 0.000000e+00 : f32
    %19 = vector.broadcast %cst_10 : f32 to vector<8x8xf32>
    %20 = arith.subf %19, %18 : vector<8x8xf32>
    %21 = math.exp %20 : vector<8x8xf32>
    %cst_11 = arith.constant dense<0.000000e+00> : vector<8x8xf32>
    %22 = tpu.matmul %4, %21, %cst_11 {dimension_numbers = #tpu.dot_dimension_numbers<[1], [0], [0], [1], [0, 0, 1, 1], [], []>} : vector<8x8xf32>, vector<8x8xf32>, vector<8x8xf32> -> vector<8x8xf32>
    %cst_12 = arith.constant dense<0.000000e+00> : vector<8x8xf32>
    %23 = tpu.matmul %22, %4, %cst_12 {dimension_numbers = #tpu.dot_dimension_numbers<[1], [0], [0], [1], [0, 0, 1, 1], [], []>} : vector<8x8xf32>, vector<8x8xf32>, vector<8x8xf32> -> vector<8x8xf32>
    %24 = tpu.transpose %3, [1, 0] : vector<8x4xf32> -> vector<4x8xf32>
    %cst_13 = arith.constant dense<0.000000e+00> : vector<8x8xf32>
    %25 = tpu.matmul %3, %24, %cst_13 {dimension_numbers = #tpu.dot_dimension_numbers<[1], [0], [0], [1], [0, 0, 1, 1], [], []>} : vector<8x4xf32>, vector<4x8xf32>, vector<8x8xf32> -> vector<8x8xf32>
    %cst_14 = arith.constant dense<0.000000e+00> : vector<8xf32>
    %26 = vector.multi_reduction <add>, %25, %cst_14 [1] : vector<8x8xf32> to vector<8xf32>
    %27 = vector.shape_cast %26 : vector<8xf32> to vector<8x1xf32>
    %cst_15 = arith.constant 8.000000e+00 : f32
    %28 = vector.broadcast %cst_15 : f32 to vector<8x1xf32>
    %29 = arith.divf %27, %28 : vector<8x1xf32>
    %cst_16 = arith.constant dense<0.000000e+00> : vector<8xf32>
    %30 = vector.multi_reduction <add>, %25, %cst_16 [0] : vector<8x8xf32> to vector<8xf32>
    %31 = vector.shape_cast %30 : vector<8xf32> to vector<1x8xf32>
    %cst_17 = arith.constant 8.000000e+00 : f32
    %32 = vector.broadcast %cst_17 : f32 to vector<1x8xf32>
    %33 = arith.divf %31, %32 : vector<1x8xf32>
    %34 = vector.shape_cast %25 : vector<8x8xf32> to vector<1x8x8xf32>
    %cst_18 = arith.constant dense<0.000000e+00> : vector<1xf32>
    %35 = vector.multi_reduction <add>, %34, %cst_18 [1, 2] : vector<1x8x8xf32> to vector<1xf32>
    %36 = vector.shape_cast %35 : vector<1xf32> to vector<1x1x1xf32>
    %37 = vector.extract %36[0, 0, 0] : f32 from vector<1x1x1xf32>
    %cst_19 = arith.constant 6.400000e+01 : f32
    %38 = arith.divf %37, %cst_19 : f32
    %39 = vector.broadcast %29 : vector<8x1xf32> to vector<8x8xf32>
    %40 = arith.subf %25, %39 : vector<8x8xf32>
    %41 = vector.broadcast %33 : vector<1x8xf32> to vector<8x8xf32>
    %42 = arith.subf %40, %41 : vector<8x8xf32>
    %43 = vector.broadcast %38 : f32 to vector<8x8xf32>
    %44 = arith.addf %42, %43 : vector<8x8xf32>
    %45 = arith.mulf %23, %44 : vector<8x8xf32>
    %46 = vector.shape_cast %45 : vector<8x8xf32> to vector<1x8x8xf32>
    %cst_20 = arith.constant dense<0.000000e+00> : vector<1xf32>
    %47 = vector.multi_reduction <add>, %46, %cst_20 [1, 2] : vector<1x8x8xf32> to vector<1xf32>
    %48 = vector.shape_cast %47 : vector<1xf32> to vector<1x1x1xf32>
    %49 = vector.extract %48[0, 0, 0] : f32 from vector<1x1x1xf32>
    %cst_21 = arith.constant 0.0204081628 : f32
    %50 = arith.mulf %49, %cst_21 : f32
    %51 = arith.index_cast %arg0 : i32 to index
    %52 = memref.load %arg4[%51] : memref<1xf32, #tpu.memory_space<smem>>
    memref.store %50, %arg4[%51] : memref<1xf32, #tpu.memory_space<smem>>
    return
  }
  func.func @transform_0(%arg0: i32) -> (i32, i32, i32) {
    %c0_i32 = arith.constant 0 : i32
    %c0_i32_0 = arith.constant 0 : i32
    %c0_i32_1 = arith.constant 0 : i32
    return %arg0, %c0_i32, %c0_i32_0 : i32, i32, i32
  }
  func.func @transform_1(%arg0: i32) -> (i32, i32, i32) {
    %c0_i32 = arith.constant 0 : i32
    %c0_i32_0 = arith.constant 0 : i32
    %c0_i32_1 = arith.constant 0 : i32
    return %arg0, %c0_i32, %c0_i32_0 : i32, i32, i32
  }
  func.func @transform_2(%arg0: i32) -> (i32, i32) {
    %c0_i32 = arith.constant 0 : i32
    %c0_i32_0 = arith.constant 0 : i32
    %c0_i32_1 = arith.constant 0 : i32
    return %c0_i32, %c0_i32_0 : i32, i32
  }
  func.func @transform_3(%arg0: i32) -> i32 {
    %c0_i32 = arith.constant 0 : i32
    %c0_i32_0 = arith.constant 0 : i32
    return %c0_i32 : i32
  }
}

</mosaic_0001>

<bundles_post_ra>
// kernel: tpu_custom_call.1
= control target key start
LH: loop header
LB: loop body
LE: loop exit
PB: predicated region body
PF: predicated region fallthrough
CT: control target
= control target key end

     0   :  { %vm19_vm0 = vcmask 31744   ;;  %v467_v1 = vmov 0.0   ;;  %vm468_vm1 = vmmov 0   ;;  %s524_s0 = inlined_call_operand.vmem [shape: f32[1,8,4], index: 0, kind: input, shape index: {}]   ;;  %s525_s1 = inlined_call_operand.vmem [shape: f32[1,8,4], index: 1, kind: input, shape index: {}]   ;;  %s526_s2 = inlined_call_operand.vmem [shape: f32[8,8], index: 2, kind: input, shape index: {}]   ;;  %s527_s3 = inlined_call_operand.hbm [shape: f32[1], index: 3, kind: output, shape index: {}]  }
   0x1   :  { %v15_v0 = vld [vmem:[%s524_s0] sm:$0xff]  ;;  %426 = vmatprep.subr.mxu0 %v467_v1  ;;  %428 = vmatprep.mubr.msk.f32.mxu0 %vm468_vm1, %v467_v1 }
   0x2   :  { %v18_v2 = vmul.f32 %v15_v0, %v15_v0 }
   0x3   :  { %8 = vsyncpa [#allocation3], 0  ;;  %427 = vmatpush3.xpose.msk.msra.mxu0 %vm19_vm0, %v15_v0  ;;  %431 = vmatprep.subr.mxu1 %v467_v1  ;;  %v16_v4 = vld [vmem:[%s525_s1] sm:$0xff]  ;;  %vm139_vm2 = vcmask 64512   ;;  %v130_v11 = vlaneseq  ;;  %s455_s21 = scalar_lea.hbm %s527_s3, 16 }
   0x4   :  { %v20_v3 = vsel %vm19_vm0, %v18_v2, 0.0  ;;  %441 = vmatprep.subr.mxu0 %v467_v1  ;;  %433 = vmatprep.mubr.msk.f32.mxu1 %vm468_vm1, %v467_v1  ;;  %v17_v22 = vld [vmem:[%s526_s2] sm:$0xff]  ;;  %p456_p0 = scmp.ne.s32.totalorder %s527_s3, %s455_s21  ;;  %p459_p1 = scmp.lt.u32.totalorder %s455_s21, %s527_s3 }
   0x5   :  { %21 = vadd.xlane.f32.xlu0 %v20_v3  ;;  %v131_v12 = vshrl.u32 %v130_v11, 7 }
   0x6   :  { %429 = vmatmul.mubr.msk.f32.vlgmr.msra.gmra.mrb[0].mxu0 %vm19_vm0, %v15_v0  ;;  %p461_p2 = pnand %p459_p1, %p456_p0 }
   0x7   :  { %442 = vmatpush3.xpose.msk.msra.mxu0 %vm19_vm0, %v16_v4  ;;  %443 = vmatprep.mubr.msk.f32.mxu0 %vm468_vm1, %v467_v1  ;;  %v132_v14 = vsub.s32 0, %v131_v12 }
   0xa   :  { %444 = vmatmul.mubr.msk.f32.vlgmr.msra.gmra.mrb[2].mxu0 %vm19_vm0, %v16_v4 }
  0x92   :  { %v22_v5 = vpop.xlane.xlu0 %21 }
  0x93   :  { %98 = vxpose.xlu0.b32.start.end [1/1] (short) (narrow) %v22_v5, 8 }
  0xd9   :  { %v92_v6 = vpop.f32.mrb[0].mxu0 }
  0xda   :  { %v430_v7 = vpop.f32.mrb[1].mxu0  ;;  %v96_v13 = vmul.f32 -2.0, %v92_v6 }
  0xdc   :  { %v97_v16 = vadd.f32 %v96_v13, %v22_v5 }
  0xdd   :  { %v355_v8 = vpop.f32.mrb[2].mxu0 }
  0xde   :  { %v359_v9 = vsel %vm139_vm2, %v355_v8, 0.0  ;;  %v445_v10 = vpop.f32.mrb[3].mxu0 }
  0xdf   :  { %360 = vadd.xlane.f32.xlu1 %v359_v9  ;;  %v364_v24 = vrot.slane %v359_v9, 4 }
  0xe1   :  { %v365_v27 = vadd.f32 %v364_v24, %v359_v9 }
  0xe3   :  { %v366_v30 = vrot.slane %v365_v27, 2 }
  0xe5   :  { %v367_v33 = vadd.f32 %v366_v30, %v365_v27 }
  0xe7   :  { %v368_v35 = vrot.slane %v367_v33, 1 }
  0xe9   :  { %v369_v38 = vadd.f32 %v368_v35, %v367_v33 }
  0xeb   :  { %v370_v39 = vmul.f32 0.125, %v369_v38 }
 0x113   :  { %v114_v15 = vpop.trf.xlu0 }
 0x114   :  { %v133_v17 = vrot.slane %v114_v15, %v132_v14 }
 0x116   :  { %v134_v18 = vadd.f32 %v133_v17, %v97_v16 }
 0x118   :  { %v135_v19 = vmax.f32 %v134_v18, 0.0 }
 0x11a   :  { %v136_v20 = vsub.f32 0.0, %v135_v19 }
 0x11c   :  { %v137_v21 = vmul.f32 1.442695, %v136_v20 }
 0x11e   :  { %453 = vpow2.f32 %v137_v21 }
 0x128   :  { %v454_v23 = vpop.eup %453 }
 0x129   :  { %432 = vmatpush3.msra.mxu1 %v454_v23 }
 0x12a   :  { %434 = vmatmul.mubr.msk.f32.vlgmr.msra.gmra.mrb[0].mxu1 %vm139_vm2, %v17_v22  ;;  %436 = vmatprep.subr.mxu1 %v467_v1 }
 0x12b   :  { %437 = vmatpush3.msra.mxu1 %v17_v22  ;;  %438 = vmatprep.mubr.msk.f32.mxu1 %vm468_vm1, %v467_v1 }
 0x16c   :  { %v361_v25 = vpop.xlane.xlu1 %360 }
 0x16d   :  { %v371_v26 = vrot.slane %v361_v25, 4  ;;  %v363_v36 = vmul.f32 0.125, %v361_v25 }
 0x16f   :  { %v372_v28 = vadd.f32 %v371_v26, %v361_v25  ;;  %v381_v37 = vsub.f32 %v355_v8, %v363_v36 }
 0x171   :  { %v373_v29 = vrot.slane %v372_v28, 2  ;;  %v382_v40 = vsub.f32 %v381_v37, %v370_v39 }
 0x173   :  { %v374_v31 = vadd.f32 %v373_v29, %v372_v28 }
 0x175   :  { %v375_v32 = vrot.slane %v374_v31, 1 }
 0x177   :  { %v376_v34 = vadd.f32 %v375_v32, %v374_v31 }
 0x179   :  { %446 = vpush %v376_v34 }
 0x1aa   :  { %s447_s2 = spop %446 }
 0x1ab   :  { %s380_s16 = smul.f32 0.015625, %s447_s2 }
 0x1ad   :  { %v383_v43 = vstv %s380_s16 }
 0x1ae   :  { %v384_v44 = vadd.f32 %v383_v43, %v382_v40 }
 0x1fd   :  { %v209_v41 = vpop.f32.mrb[0].mxu1 }
 0x1fe   :  { %v435_v42 = vpop.f32.mrb[1].mxu1  ;;  %439 = vmatmul.mubr.msk.f32.vlgmr.msra.gmra.mrb[2].mxu1 %vm139_vm2, %v209_v41 }
 0x2d1   :  { %v282_v45 = vpop.f32.mrb[2].mxu1 }
 0x2d2   :  { %v385_v46 = vmul.f32 %v384_v44, %v282_v45  ;;  %v440_v47 = vpop.f32.mrb[3].mxu1 }
 0x2d4   :  { %v386_v48 = vsel %vm139_vm2, %v385_v46, 0.0 }
 0x2d5   :  { %387 = vadd.xlane.f32.xlu1 %v386_v48 }
 0x362   :  { %v388_v49 = vpop.xlane.xlu1 %387 }
 0x363   :  { %v389_v50 = vrot.slane %v388_v49, 4 }
 0x365   :  { %v390_v51 = vadd.f32 %v389_v50, %v388_v49 }
 0x367   :  { %v391_v52 = vrot.slane %v390_v51, 2 }
 0x369   :  { %v392_v53 = vadd.f32 %v391_v52, %v390_v51 }
 0x36b   :  { %v393_v54 = vrot.slane %v392_v53, 1 }
 0x36d   :  { %v394_v55 = vadd.f32 %v393_v54, %v392_v53 }
 0x36f   :  { %448 = vpush %v394_v55 }
 0x3a0   :  { %s449_s17 = spop %448 }
 0x3a1   :  { %s396_s18 = smul.f32 0.020408163, %s449_s17 }
 0x3a3   :  { %398 = sst [smem:[#allocation2]] %s396_s18 }
 0x3a4   :  { %464 = shalt.err (!%p461_p2)
}
 0x3a5   :  { %s469_s26 = smov [#allocation2]  }
 0x3a6   :  { %406 = dma.smem_to_hbm %s469_s26, 16, %s527_s3, [#allocation3]  }
 0x3a7   :  { %465 = dma.done.wait [#allocation3], 16  }
 0x3a8   :  { %466 = vsyncadd [#allocation3], 4294967280 }
 0x3a9   :  { %410 = sfence }
 0x3aa   :  { %411 = vsyncpa [#allocation3], 1 }

</bundles_post_ra>
